<compile_context>
chip_gen: v7x
topology: tpu7x:2x2x1
jax: 0.10.0
libtpu: 0.0.40
codegen_flags: <defaults>
</compile_context>

<pallas_src>
import functools

import jax
import jax.numpy as jnp
from jax.experimental import pallas as pl
from jax.experimental.pallas import tpu as pltpu


def _sepconv_kernel(x_ref, dw_ref, pw_ref, bias_ref, o_ref,
                    *, TH, W, C, KS, DIL):
    # x_ref   : (1, Hp, Wp, C)  bf16  full padded image (resident across row blocks)
    # dw_ref  : (KS*KS, C)      f32   depthwise taps with BN scale folded in
    # pw_ref  : (C, Cout)       bf16  pointwise (1x1) weights
    # bias_ref: (1, Cout)       f32   BN shift pushed through the pointwise conv
    # o_ref   : (1, TH, W, Cout) f32  one row block of the output
    h = pl.program_id(1)
    row0 = h * TH
    if TH % 8 == 0:
        row0 = pl.multiple_of(row0, 8)
    win_rows = TH + (KS - 1) * DIL

    # Load the input row window once and upcast to f32 once (v5e VPU has no bf16).
    xw = x_ref[0, pl.ds(row0, win_rows), :, :].astype(jnp.float32)  # (win_rows, Wp, C)

    # Depthwise conv: 9 shifted windows * per-channel tap (VPU); BN scale is
    # already folded into dw, so no extra affine pass over the accumulator.
    acc = jnp.zeros((TH, W, C), jnp.float32)
    for kh in range(KS):
        for kw in range(KS):
            tap = dw_ref[kh * KS + kw, :]                         # (C,) f32
            acc = acc + xw[kh * DIL:kh * DIL + TH,
                           kw * DIL:kw * DIL + W, :] * tap

    # Pointwise 1x1 conv == matmul over channels (MXU): bf16 operands,
    # f32 accumulation.  BN shift enters as a per-Cout bias.
    y = jnp.dot(acc.reshape(TH * W, C).astype(jnp.bfloat16), pw_ref[...],
                preferred_element_type=jnp.float32)
    y = y + bias_ref[0, :]
    o_ref[...] = y.reshape(1, TH, W, -1).astype(o_ref.dtype)


def separable_conv2d(x_nchw, dw_w, bn_gamma, bn_beta, bn_mean, bn_var, pw_w,
                     *, kernel_size=3, dilation=1, eps=1e-5, row_block=8):
    """x_nchw: (N, C, H, W). dw_w: (C, 1, KS, KS). pw_w: (Cout, C, 1, 1)."""
    N, C, H, W = x_nchw.shape
    Cout = pw_w.shape[0]
    KS = kernel_size

    # fixed padding (stride=1): pad_total = effective_kernel - 1, split beg/end.
    k_eff = KS + (KS - 1) * (dilation - 1)
    pad_total = k_eff - 1
    pad_beg = pad_total // 2
    pad_end = pad_total - pad_beg

    # NCHW -> NHWC (channels on the lane dim) + spatial pad, in bf16 to halve
    # HBM traffic.  See TODO above re: keeping NHWC end-to-end in a full net.
    x_nhwc = jnp.transpose(x_nchw.astype(jnp.bfloat16), (0, 2, 3, 1))
    xp = jnp.pad(x_nhwc, ((0, 0), (pad_beg, pad_end), (pad_beg, pad_end), (0, 0)))
    Hp, Wp = H + pad_total, W + pad_total

    # --- Parameter prep: fold BN (eval mode) into the weights (exact, linear). ---
    scale = (bn_gamma / jnp.sqrt(bn_var + eps)).astype(jnp.float32)        # (C,)
    shift = (bn_beta - bn_mean * scale).astype(jnp.float32)                # (C,)
    dw = dw_w.reshape(C, KS * KS).T.astype(jnp.float32) * scale[None, :]   # (KS*KS, C)
    pw = pw_w.reshape(Cout, C).T.astype(jnp.bfloat16)                      # (C, Cout) bf16
    bias = (shift @ pw.astype(jnp.float32)).reshape(1, Cout)               # (1, Cout) f32

    # Row-block size: multiple of 8 sublanes when possible.  At real SwiftNet
    # channel counts size this against the per-generation VMEM budget
    # (v7x ~16-32 rows; v5e/v6e can take ~2x more).
    TH = row_block if (H % row_block == 0) else H
    nH = H // TH

    kern = functools.partial(_sepconv_kernel, TH=TH, W=W, C=C, KS=KS, DIL=dilation)

    out_nhwc = pl.pallas_call(
        kern,
        out_shape=jax.ShapeDtypeStruct((N, H, W, Cout), jnp.float32),
        grid_spec=pltpu.PrefetchScalarGridSpec(
            num_scalar_prefetch=0,
            grid=(N, nH),
            in_specs=[
                # Block index ignores h -> the image is DMA'd once per batch
                # element and stays resident while its row blocks are computed.
                pl.BlockSpec((1, Hp, Wp, C), lambda n, h: (n, 0, 0, 0)),
                pl.BlockSpec((KS * KS, C), lambda n, h: (0, 0)),
                pl.BlockSpec((C, Cout), lambda n, h: (0, 0)),
                pl.BlockSpec((1, Cout), lambda n, h: (0, 0)),
            ],
            out_specs=pl.BlockSpec((1, TH, W, Cout), lambda n, h: (n, h, 0, 0)),
        ),
        compiler_params=pltpu.CompilerParams(
            dimension_semantics=("parallel", "parallel"),
            # >= default on all of v5e/v6e/v7x, well under v7x's 64 MiB physical.
            vmem_limit_bytes=32 * 1024 * 1024,
        ),
    )(xp, dw, pw, bias)

    # NHWC -> NCHW to match the PyTorch output convention.
    return jnp.transpose(out_nhwc, (0, 3, 1, 2))


def _reference(x_nchw, dw_w, bn_gamma, bn_beta, bn_mean, bn_var, pw_w,
               *, kernel_size=3, dilation=1, eps=1e-5):
    C = x_nchw.shape[1]
    KS = kernel_size
    k_eff = KS + (KS - 1) * (dilation - 1)
    pad_total = k_eff - 1
    pad_beg = pad_total // 2
    pad_end = pad_total - pad_beg
    y = jax.lax.conv_general_dilated(
        x_nchw, dw_w, window_strides=(1, 1),
        padding=((pad_beg, pad_end), (pad_beg, pad_end)),
        rhs_dilation=(dilation, dilation),
        feature_group_count=C,
        dimension_numbers=("NCHW", "OIHW", "NCHW"))
    scale = (bn_gamma / jnp.sqrt(bn_var + eps)).reshape(1, C, 1, 1)
    shift = (bn_beta - bn_mean * (bn_gamma / jnp.sqrt(bn_var + eps))).reshape(1, C, 1, 1)
    y = y * scale + shift
    y = jax.lax.conv_general_dilated(
        y, pw_w, window_strides=(1, 1), padding=((0, 0), (0, 0)),
        dimension_numbers=("NCHW", "OIHW", "NCHW"))
    return y


if __name__ == "__main__":
    N, Cin, Cout, H, W, KS = 2, 4, 8, 16, 16, 3

    key = jax.random.PRNGKey(0)
    k1, k2, k3, k4, k5, k6 = jax.random.split(key, 6)

    x = jax.random.normal(k1, (N, Cin, H, W), jnp.float32)
    dw_w = jax.random.normal(k2, (Cin, 1, KS, KS), jnp.float32) * 0.1   # depthwise
    pw_w = jax.random.normal(k3, (Cout, Cin, 1, 1), jnp.float32) * 0.1  # pointwise
    bn_gamma = 1.0 + 0.1 * jax.random.normal(k4, (Cin,), jnp.float32)
    bn_beta = 0.1 * jax.random.normal(k5, (Cin,), jnp.float32)
    bn_mean = 0.1 * jax.random.normal(k6, (Cin,), jnp.float32)
    bn_var = jnp.abs(jax.random.normal(key, (Cin,), jnp.float32)) + 0.5

    # Reference sees the same bf16-rounded activations / pointwise weights the
    # kernel consumes, so the comparison isolates kernel correctness.
    x_q = x.astype(jnp.bfloat16).astype(jnp.float32)
    pw_q = pw_w.astype(jnp.bfloat16).astype(jnp.float32)

    for dil in (1, 2):
        out = separable_conv2d(x, dw_w, bn_gamma, bn_beta, bn_mean, bn_var, pw_w,
                               kernel_size=KS, dilation=dil)
        out = jax.block_until_ready(out)
        ref = _reference(x_q, dw_w, bn_gamma, bn_beta, bn_mean, bn_var, pw_q,
                         kernel_size=KS, dilation=dil)
        assert out.shape == (N, Cout, H, W), out.shape
        err = float(jnp.max(jnp.abs(out - ref)))
        assert jnp.allclose(out, ref, atol=1e-2, rtol=1e-2), (dil, err)

    print("KERNEL_OK")
</pallas_src>

<mosaic_0001>
module attributes {stable_mosaic.version = 11 : i64} {
  func.func @_sepconv_kernel(%arg0: i32, %arg1: i32, %arg2: memref<1x18x18x4xbf16, #tpu.memory_space<vmem>>, %arg3: memref<9x4xf32, #tpu.memory_space<vmem>>, %arg4: memref<4x8xbf16, #tpu.memory_space<vmem>>, %arg5: memref<1x8xf32, #tpu.memory_space<vmem>>, %arg6: memref<1x8x16x8xf32, #tpu.memory_space<vmem>>) attributes {dimension_semantics = [#tpu.dimension_semantics<parallel>, #tpu.dimension_semantics<parallel>], iteration_bounds = array<i64: 2, 2>, scalar_prefetch = 0 : i64, scratch_operands = 0 : i64, tpu.core_type = #tpu.core_type<tc>, window_params = [{transform_indices = @transform_0, window_bounds = array<i64: 1, 18, 18, 4>}, {pipeline_mode = #tpu.pipeline_mode<synchronous>, transform_indices = @transform_1, window_bounds = array<i64: 9, 4>}, {pipeline_mode = #tpu.pipeline_mode<synchronous>, transform_indices = @transform_2, window_bounds = array<i64: 4, 8>}, {pipeline_mode = #tpu.pipeline_mode<synchronous>, transform_indices = @transform_3, window_bounds = array<i64: 1, 8>}, {transform_indices = @transform_4, window_bounds = array<i64: 1, 8, 16, 8>}]} {
    %c8_i32 = arith.constant 8 : i32
    %0 = arith.muli %arg1, %c8_i32 : i32
    %1 = tpu.assume_multiple %0, 8 : i32
    %c0 = arith.constant 0 : index
    %2 = arith.index_cast %1 : i32 to index
    %c0_0 = arith.constant 0 : index
    %c0_1 = arith.constant 0 : index
    %3 = vector.load %arg2[%c0, %2, %c0_0, %c0_1] : memref<1x18x18x4xbf16, #tpu.memory_space<vmem>>, vector<1x10x18x4xbf16>
    %4 = vector.shape_cast %3 : vector<1x10x18x4xbf16> to vector<10x18x4xbf16>
    %5 = arith.extf %4 : vector<10x18x4xbf16> to vector<10x18x4xf32>
    %cst = arith.constant 0.000000e+00 : f32
    %6 = vector.broadcast %cst : f32 to vector<8x16x4xf32>
    %c0_2 = arith.constant 0 : index
    %c0_3 = arith.constant 0 : index
    %7 = vector.load %arg3[%c0_2, %c0_3] : memref<9x4xf32, #tpu.memory_space<vmem>>, vector<1x4xf32>
    %8 = vector.shape_cast %7 : vector<1x4xf32> to vector<4xf32>
    %9 = vector.extract_strided_slice %5 {offsets = [0, 0, 0], sizes = [8, 16, 4], strides = [1, 1, 1]} : vector<10x18x4xf32> to vector<8x16x4xf32>
    %10 = vector.shape_cast %8 : vector<4xf32> to vector<1x1x4xf32>
    %11 = vector.broadcast %10 : vector<1x1x4xf32> to vector<8x16x4xf32>
    %12 = arith.mulf %9, %11 : vector<8x16x4xf32>
    %13 = arith.addf %6, %12 : vector<8x16x4xf32>
    %c1 = arith.constant 1 : index
    %c0_4 = arith.constant 0 : index
    %14 = vector.load %arg3[%c1, %c0_4] : memref<9x4xf32, #tpu.memory_space<vmem>>, vector<1x4xf32>
    %15 = vector.shape_cast %14 : vector<1x4xf32> to vector<4xf32>
    %16 = vector.extract_strided_slice %5 {offsets = [0, 1, 0], sizes = [8, 16, 4], strides = [1, 1, 1]} : vector<10x18x4xf32> to vector<8x16x4xf32>
    %17 = vector.shape_cast %15 : vector<4xf32> to vector<1x1x4xf32>
    %18 = vector.broadcast %17 : vector<1x1x4xf32> to vector<8x16x4xf32>
    %19 = arith.mulf %16, %18 : vector<8x16x4xf32>
    %20 = arith.addf %13, %19 : vector<8x16x4xf32>
    %c2 = arith.constant 2 : index
    %c0_5 = arith.constant 0 : index
    %21 = vector.load %arg3[%c2, %c0_5] : memref<9x4xf32, #tpu.memory_space<vmem>>, vector<1x4xf32>
    %22 = vector.shape_cast %21 : vector<1x4xf32> to vector<4xf32>
    %23 = vector.extract_strided_slice %5 {offsets = [0, 2, 0], sizes = [8, 16, 4], strides = [1, 1, 1]} : vector<10x18x4xf32> to vector<8x16x4xf32>
    %24 = vector.shape_cast %22 : vector<4xf32> to vector<1x1x4xf32>
    %25 = vector.broadcast %24 : vector<1x1x4xf32> to vector<8x16x4xf32>
    %26 = arith.mulf %23, %25 : vector<8x16x4xf32>
    %27 = arith.addf %20, %26 : vector<8x16x4xf32>
    %c3 = arith.constant 3 : index
    %c0_6 = arith.constant 0 : index
    %28 = vector.load %arg3[%c3, %c0_6] : memref<9x4xf32, #tpu.memory_space<vmem>>, vector<1x4xf32>
    %29 = vector.shape_cast %28 : vector<1x4xf32> to vector<4xf32>
    %30 = vector.extract_strided_slice %5 {offsets = [1, 0, 0], sizes = [8, 16, 4], strides = [1, 1, 1]} : vector<10x18x4xf32> to vector<8x16x4xf32>
    %31 = vector.shape_cast %29 : vector<4xf32> to vector<1x1x4xf32>
    %32 = vector.broadcast %31 : vector<1x1x4xf32> to vector<8x16x4xf32>
    %33 = arith.mulf %30, %32 : vector<8x16x4xf32>
    %34 = arith.addf %27, %33 : vector<8x16x4xf32>
    %c4 = arith.constant 4 : index
    %c0_7 = arith.constant 0 : index
    %35 = vector.load %arg3[%c4, %c0_7] : memref<9x4xf32, #tpu.memory_space<vmem>>, vector<1x4xf32>
    %36 = vector.shape_cast %35 : vector<1x4xf32> to vector<4xf32>
    %37 = vector.extract_strided_slice %5 {offsets = [1, 1, 0], sizes = [8, 16, 4], strides = [1, 1, 1]} : vector<10x18x4xf32> to vector<8x16x4xf32>
    %38 = vector.shape_cast %36 : vector<4xf32> to vector<1x1x4xf32>
    %39 = vector.broadcast %38 : vector<1x1x4xf32> to vector<8x16x4xf32>
    %40 = arith.mulf %37, %39 : vector<8x16x4xf32>
    %41 = arith.addf %34, %40 : vector<8x16x4xf32>
    %c5 = arith.constant 5 : index
    %c0_8 = arith.constant 0 : index
    %42 = vector.load %arg3[%c5, %c0_8] : memref<9x4xf32, #tpu.memory_space<vmem>>, vector<1x4xf32>
    %43 = vector.shape_cast %42 : vector<1x4xf32> to vector<4xf32>
    %44 = vector.extract_strided_slice %5 {offsets = [1, 2, 0], sizes = [8, 16, 4], strides = [1, 1, 1]} : vector<10x18x4xf32> to vector<8x16x4xf32>
    %45 = vector.shape_cast %43 : vector<4xf32> to vector<1x1x4xf32>
    %46 = vector.broadcast %45 : vector<1x1x4xf32> to vector<8x16x4xf32>
    %47 = arith.mulf %44, %46 : vector<8x16x4xf32>
    %48 = arith.addf %41, %47 : vector<8x16x4xf32>
    %c6 = arith.constant 6 : index
    %c0_9 = arith.constant 0 : index
    %49 = vector.load %arg3[%c6, %c0_9] : memref<9x4xf32, #tpu.memory_space<vmem>>, vector<1x4xf32>
    %50 = vector.shape_cast %49 : vector<1x4xf32> to vector<4xf32>
    %51 = vector.extract_strided_slice %5 {offsets = [2, 0, 0], sizes = [8, 16, 4], strides = [1, 1, 1]} : vector<10x18x4xf32> to vector<8x16x4xf32>
    %52 = vector.shape_cast %50 : vector<4xf32> to vector<1x1x4xf32>
    %53 = vector.broadcast %52 : vector<1x1x4xf32> to vector<8x16x4xf32>
    %54 = arith.mulf %51, %53 : vector<8x16x4xf32>
    %55 = arith.addf %48, %54 : vector<8x16x4xf32>
    %c7 = arith.constant 7 : index
    %c0_10 = arith.constant 0 : index
    %56 = vector.load %arg3[%c7, %c0_10] : memref<9x4xf32, #tpu.memory_space<vmem>>, vector<1x4xf32>
    %57 = vector.shape_cast %56 : vector<1x4xf32> to vector<4xf32>
    %58 = vector.extract_strided_slice %5 {offsets = [2, 1, 0], sizes = [8, 16, 4], strides = [1, 1, 1]} : vector<10x18x4xf32> to vector<8x16x4xf32>
    %59 = vector.shape_cast %57 : vector<4xf32> to vector<1x1x4xf32>
    %60 = vector.broadcast %59 : vector<1x1x4xf32> to vector<8x16x4xf32>
    %61 = arith.mulf %58, %60 : vector<8x16x4xf32>
    %62 = arith.addf %55, %61 : vector<8x16x4xf32>
    %c8 = arith.constant 8 : index
    %c0_11 = arith.constant 0 : index
    %63 = vector.load %arg3[%c8, %c0_11] : memref<9x4xf32, #tpu.memory_space<vmem>>, vector<1x4xf32>
    %64 = vector.shape_cast %63 : vector<1x4xf32> to vector<4xf32>
    %65 = vector.extract_strided_slice %5 {offsets = [2, 2, 0], sizes = [8, 16, 4], strides = [1, 1, 1]} : vector<10x18x4xf32> to vector<8x16x4xf32>
    %66 = vector.shape_cast %64 : vector<4xf32> to vector<1x1x4xf32>
    %67 = vector.broadcast %66 : vector<1x1x4xf32> to vector<8x16x4xf32>
    %68 = arith.mulf %65, %67 : vector<8x16x4xf32>
    %69 = arith.addf %62, %68 : vector<8x16x4xf32>
    %70 = vector.shape_cast %69 : vector<8x16x4xf32> to vector<128x4xf32>
    %71 = arith.truncf %70 : vector<128x4xf32> to vector<128x4xbf16>
    %c0_12 = arith.constant 0 : index
    %c0_13 = arith.constant 0 : index
    %72 = vector.load %arg4[%c0_12, %c0_13] : memref<4x8xbf16, #tpu.memory_space<vmem>>, vector<4x8xbf16>
    %cst_14 = arith.constant dense<0.000000e+00> : vector<128x8xf32>
    %73 = tpu.matmul %71, %72, %cst_14 {dimension_numbers = #tpu.dot_dimension_numbers<[1], [0], [0], [1], [0, 0, 1, 1], [], []>} : vector<128x4xbf16>, vector<4x8xbf16>, vector<128x8xf32> -> vector<128x8xf32>
    %c0_15 = arith.constant 0 : index
    %c0_16 = arith.constant 0 : index
    %74 = vector.load %arg5[%c0_15, %c0_16] : memref<1x8xf32, #tpu.memory_space<vmem>>, vector<1x8xf32>
    %75 = vector.shape_cast %74 : vector<1x8xf32> to vector<8xf32>
    %76 = vector.shape_cast %75 : vector<8xf32> to vector<1x8xf32>
    %77 = vector.broadcast %76 : vector<1x8xf32> to vector<128x8xf32>
    %78 = arith.addf %73, %77 : vector<128x8xf32>
    %79 = vector.shape_cast %78 : vector<128x8xf32> to vector<1x8x16x8xf32>
    %c0_17 = arith.constant 0 : index
    %c0_18 = arith.constant 0 : index
    %c0_19 = arith.constant 0 : index
    %c0_20 = arith.constant 0 : index
    %80 = vector.load %arg6[%c0_17, %c0_18, %c0_19, %c0_20] : memref<1x8x16x8xf32, #tpu.memory_space<vmem>>, vector<1x8x16x8xf32>
    tpu.vector_store %arg6[%c0_17, %c0_18, %c0_19, %c0_20], %79 {strides = array<i32>} : memref<1x8x16x8xf32, #tpu.memory_space<vmem>>, vector<1x8x16x8xf32>,
    return
  }
  func.func @transform_0(%arg0: i32, %arg1: i32) -> (i32, i32, i32, i32) {
    %c0_i32 = arith.constant 0 : i32
    %c0_i32_0 = arith.constant 0 : i32
    %c0_i32_1 = arith.constant 0 : i32
    %c0_i32_2 = arith.constant 0 : i32
    return %arg0, %c0_i32, %c0_i32_0, %c0_i32_1 : i32, i32, i32, i32
  }
  func.func @transform_1(%arg0: i32, %arg1: i32) -> (i32, i32) {
    %c0_i32 = arith.constant 0 : i32
    %c0_i32_0 = arith.constant 0 : i32
    %c0_i32_1 = arith.constant 0 : i32
    return %c0_i32, %c0_i32_0 : i32, i32
  }
  func.func @transform_2(%arg0: i32, %arg1: i32) -> (i32, i32) {
    %c0_i32 = arith.constant 0 : i32
    %c0_i32_0 = arith.constant 0 : i32
    %c0_i32_1 = arith.constant 0 : i32
    return %c0_i32, %c0_i32_0 : i32, i32
  }
  func.func @transform_3(%arg0: i32, %arg1: i32) -> (i32, i32) {
    %c0_i32 = arith.constant 0 : i32
    %c0_i32_0 = arith.constant 0 : i32
    %c0_i32_1 = arith.constant 0 : i32
    return %c0_i32, %c0_i32_0 : i32, i32
  }
  func.func @transform_4(%arg0: i32, %arg1: i32) -> (i32, i32, i32, i32) {
    %c0_i32 = arith.constant 0 : i32
    %c0_i32_0 = arith.constant 0 : i32
    %c0_i32_1 = arith.constant 0 : i32
    return %arg0, %arg1, %c0_i32, %c0_i32_0 : i32, i32, i32, i32
  }
}

</mosaic_0001>

<bundles_post_ra>
// kernel: tpu_custom_call.1
= control target key start
LH: loop header
LB: loop body
LE: loop exit
PB: predicated region body
PF: predicated region fallthrough
CT: control target
= control target key end

     0   :  { %s1606_s15 = smov 0   ;;  %s1608_s16 = smov 0   ;;  %s2312_s0 = inlined_call_operand.vmem [shape: bf16[2,18,18,4], index: 0, kind: input, shape index: {}]   ;;  %s2313_s1 = inlined_call_operand.vmem [shape: f32[9,4], index: 1, kind: input, shape index: {}]   ;;  %s2314_s2 = inlined_call_operand.vmem [shape: bf16[4,8], index: 2, kind: input, shape index: {}]   ;;  %s2315_s3 = inlined_call_operand.vmem [shape: f32[1,8], index: 3, kind: input, shape index: {}]   ;;  %s2316_s4 = inlined_call_operand.vmem [shape: f32[2,16,16,8], index: 4, kind: output, shape index: {}]  }
   0x1   :  { %s1610_s17 = smov 0   ;;  %s1612_s18 = smov 0  }
   0x2   :  { %s1614_s19 = smov 0  }
   0x3 LB: > { %s23_s20 = sadd.s32 1, %s1571_s17  ;;  %s26_s21 = sadd.s32 1, %s1575_s18  ;;  %s1579_s19 = sphi %s1614_s19, %s14_s19   ;;  %s1575_s18 = sphi %s1612_s18, %s2320_s18   ;;  %s1571_s17 = sphi %s1610_s17, %s2319_s17   ;;  %s1567_s16 = sphi %s1608_s16, %s2318_s16   ;;  %s1563_s15 = sphi %s1606_s15, %s2317_s15  }
   0x4   : > { %p24_p0 = scmp.ge.s32.totalorder %s23_s20, 2  ;;  %p1406_p1 = scmp.ge.s32.totalorder %s1579_s19, 1 }
   0x5   : > { %p176_p2 = scmp.lt.s32.totalorder %s1579_s19, 5 }
   0x6   : > { %s2322_s20 = smov (%p24_p0, %s23_s20), 0  ;;  %s2324_s21 = smov (!%p24_p0, %s26_s21), %s1575_s18 }
   0x7   : > { %p177_p3 = pnand %p1406_p1, %p176_p2  ;;  %p28_p4 = scmp.ge.s32.totalorder %s2324_s21, 2 }
   0x8   : > { %v1159_v0 = vld [vmem:[%s2314_s2] sm:$0x3] (!%p177_p3)  ;;  %vm1192_vm0 = vcmask (!%p177_p3), 1041408   ;;  %p207_p5 = scmp.lt.s32.totalorder (!%p177_p3), %s1567_s16, 1  ;;  %s1435_s24 = smul.u32 (!%p177_p3), 96, %s1563_s15  ;;  %vm378_vm1 = vcmask (!%p177_p3), 1046528  }
   0x9   : > { %s2326_s21 = smov (%p28_p4, %s2324_s21), 0  ;;  %180 = sbr.rel (%p177_p3) target bundleno = 395 (0x18b), region = 36 }
   0xa   : > { %1489 = vmatprep.subr.msk.bf16.mxu0 (!%p177_p3), %vm1192_vm0, %v1159_v0  ;;  %1490 = vmatprep.subr.msk.bf16.mxu1 (!%p177_p3), %vm1192_vm0, %v1159_v0  ;;  %v1194_v1 = vsel (!%p177_p3), %vm1192_vm0, %v1159_v0, 0  ;;  %v1653_v2 = vld [vmem:[%s2313_s1] ss:$0 sm:$0xff] (!%p177_p3)  ;;  %v1658_v3 = vld [vmem:[%s2313_s1 + $0x1] ss:$0 sm:$0xff] (!%p177_p3)  ;;  %vm504_vm2 = vcmask (!%p177_p3), 1045504  }
   0xb   : > { %1470 = vmatpush3.bf16.msra.mxu0 (!%p177_p3), %v1194_v1  ;;  %1488 = vmatpush3.bf16.msra.mxu1 (!%p177_p3), %v1194_v1  ;;  %v1663_v4 = vld [vmem:[%s2313_s1 + $0x2] ss:$0 sm:$0xff] (!%p177_p3)  ;;  %v1684_v19 = vld [vmem:[%s2313_s1 + $0x3] ss:$0 sm:$0xff] (!%p177_p3)  ;;  %v1698_v28 = vld [vmem:[%s2313_s1 + $0x4] ss:$0 sm:$0xff] (!%p177_p3) }
   0xc   : > { %v1708_v33 = vld [vmem:[%s2313_s1 + $0x5] ss:$0 sm:$0xff] (!%p177_p3)  ;;  %v1724_v46 = vld [vmem:[%s2313_s1 + $0x6] ss:$0 sm:$0xff] (!%p177_p3)  ;;  %v1734_v55 = vld [vmem:[%s2313_s1 + $0x7] ss:$0 sm:$0xff] (!%p177_p3) }
   0xd   : > { %v1743_v0 = vld [vmem:[%s2313_s1 + $0x8] ss:$0 sm:$0xff] (!%p177_p3)  ;;  %vm1167_vm3 = vcmask (!%p177_p3), 31744   ;;  %vm1293_vm4 = vcmask (!%p177_p3), 64512  }
  0x10   : > { %s2328_s16 = smov (!%p207_p5, %s1567_s16), 1 }
  0x11   : > { %s1491_s25 = smul.u32 216, %s2328_s16  ;;  %s1410_s30 = sshll.u32 %s2328_s16, 5 }
  0x13   : > { %s211_s28 = scalar_lea.vmem %s2312_s0, %s1491_s25 }
  0x14   : > { %s1648_s29 = scalar_lea.vmem %s211_s28, %s1435_s24  ;;  %s1408_s28 = sshll.u32 %s1563_s15, 3 }
  0x15   : > { %v1437_v5 = vld [vmem:[%s1648_s29] sm:$0xff]   ;;  %v230_v6 = vld [vmem:[%s1648_s29 + $0x8] sm:$0x1]  ;;  %v231_v7 = vld [vmem:[%s1648_s29 + $0xc] sm:$0xff]   ;;  %p215_p6 = scmp.lt.s32.totalorder %s1408_s28, 15 }
  0x16   : > { %v1438_v8 = vunpack.c.l.bf16 %v1437_v5  ;;  %v1439_v9 = vunpack.c.h.bf16 %v1437_v5  ;;  %v233_v10 = vld [vmem:[%s1648_s29 + $0x14] sm:$0x1]  ;;  %v1456_v11 = vld [vmem:[%s1648_s29 + $0x18] sm:$0xff]   ;;  %v236_v12 = vld [vmem:[%s1648_s29 + $0x20] sm:$0x1]  ;;  %v260_v13 = vunpack.c.l.bf16 %v230_v6  ;;  %v1671_v14 = vunpack.c.l.bf16 %v231_v7 }
  0x17   : > { %v1673_v15 = vunpack.c.l.bf16 %v1456_v11  ;;  %v1675_v16 = vunpack.c.h.bf16 %v1456_v11  ;;  %v1677_v17 = vunpack.c.h.bf16 %v231_v7  ;;  %v1679_v18 = vunpack.c.l.bf16 %v233_v10  ;;  %s2330_s28 = smov (!%p215_p6, %s1408_s28), 15 }
  0x18   : > { %v1686_v20 = vunpack.c.l.bf16 %v236_v12  ;;  %v293_v21 = vmul.f32 %v1438_v8, %v1653_v2  ;;  %v294_v22 = vmul.f32 %v1439_v9, %v1653_v2  ;;  %v330_v23 = vmul.f32 %v1438_v8, %v1658_v3  ;;  %v1457_v12 = vld [vmem:[%s1648_s29 + $0x30] sm:$0xff]  }
  0x19   : > { %v331_v24 = vmul.f32 %v1439_v9, %v1658_v3  ;;  %v332_v25 = vmul.f32 %v1658_v3, %v260_v13  ;;  %v456_v26 = vmul.f32 %v1438_v8, %v1663_v4  ;;  %v457_v27 = vmul.f32 %v1439_v9, %v1663_v4 }
  0x1a   : > { %v379_v29 = vrot.slane %v330_v23, 1  ;;  %v458_v30 = vmul.f32 %v1663_v4, %v260_v13  ;;  %v582_v31 = vmul.f32 %v1684_v19, %v1671_v14  ;;  %v583_v32 = vmul.f32 %v1684_v19, %v1677_v17 }
  0x1b   : > { %v380_v34 = vrot.slane %v331_v24, 1  ;;  %v382_v35 = vrot.slane %v332_v25, 1  ;;  %v505_v36 = vrot.slane %v456_v26, 2  ;;  %v506_v37 = vrot.slane %v457_v27, 2 }
  0x1c   : > { %v508_v38 = vrot.slane %v458_v30, 2  ;;  %v619_v39 = vmul.f32 %v1698_v28, %v1671_v14  ;;  %v620_v40 = vmul.f32 %v1698_v28, %v1677_v17  ;;  %v621_v41 = vmul.f32 %v1698_v28, %v1679_v18 }
  0x1d   : > { %v381_v42 = vsel %vm378_vm1, %v379_v29, %v380_v34  ;;  %v383_v43 = vsel %vm378_vm1, %v380_v34, %v382_v35  ;;  %v507_v44 = vsel %vm504_vm2, %v505_v36, %v506_v37  ;;  %v744_v45 = vmul.f32 %v1708_v33, %v1671_v14  ;;  %v1458_v29 = vld [vmem:[%s1648_s29 + $0x48] sm:$0xff]   ;;  %v242_v35 = vld [vmem:[%s1648_s29 + $0x38] sm:$0x1] }
  0x1e   : > { %v435_v47 = vadd.f32 %v381_v42, %v293_v21  ;;  %v436_v48 = vadd.f32 %v383_v43, %v294_v22  ;;  %v509_v49 = vsel %vm504_vm2, %v506_v37, %v508_v38  ;;  %v667_v50 = vrot.slane %v619_v39, 1 }
  0x1f   : > { %v668_v51 = vrot.slane %v620_v40, 1  ;;  %v670_v52 = vrot.slane %v621_v41, 1  ;;  %v745_v53 = vmul.f32 %v1708_v33, %v1677_v17  ;;  %v746_v54 = vmul.f32 %v1708_v33, %v1679_v18  ;;  %v243_v40 = vld [vmem:[%s1648_s29 + $0x3c] sm:$0xff]  }
  0x20   : > { %v561_v56 = vadd.f32 %v507_v44, %v435_v47  ;;  %v562_v57 = vadd.f32 %v509_v49, %v436_v48  ;;  %v792_v58 = vrot.slane %v744_v45, 2  ;;  %v869_v59 = vmul.f32 %v1673_v15, %v1724_v46  ;;  %v245_v44 = vld [vmem:[%s1648_s29 + $0x44] sm:$0x1]  ;;  %v248_v47 = vld [vmem:[%s1648_s29 + $0x50] sm:$0x1] }
  0x21   : > { %v669_v60 = vsel %vm378_vm1, %v667_v50, %v668_v51  ;;  %v671_v61 = vsel %vm378_vm1, %v668_v51, %v670_v52  ;;  %v793_v62 = vrot.slane %v745_v53, 2  ;;  %v795_v63 = vrot.slane %v746_v54, 2 }
  0x22   : > { %v598_v1 = vadd.f32 %v582_v31, %v561_v56  ;;  %v599_v5 = vadd.f32 %v583_v32, %v562_v57  ;;  %v870_v6 = vmul.f32 %v1675_v16, %v1724_v46  ;;  %v906_v7 = vmul.f32 %v1673_v15, %v1734_v55 }
  0x23   : > { %v794_v8 = vsel %vm504_vm2, %v792_v58, %v793_v62  ;;  %v796_v9 = vsel %vm504_vm2, %v793_v62, %v795_v63  ;;  %v907_v10 = vmul.f32 %v1675_v16, %v1734_v55  ;;  %v908_v11 = vmul.f32 %v1734_v55, %v1686_v20 }
  0x24   : > { %v723_v13 = vadd.f32 %v669_v60, %v598_v1  ;;  %v724_v21 = vadd.f32 %v671_v61, %v599_v5  ;;  %v954_v22 = vrot.slane %v906_v7, 1  ;;  %v1031_v23 = vmul.f32 %v1673_v15, %v1743_v0 }
  0x25   : > { %v955_v24 = vrot.slane %v907_v10, 1  ;;  %v957_v25 = vrot.slane %v908_v11, 1  ;;  %v1032_v26 = vmul.f32 %v1675_v16, %v1743_v0  ;;  %v1033_v27 = vmul.f32 %v1743_v0, %v1686_v20 }
  0x26   : > { %v848_v30 = vadd.f32 %v794_v8, %v723_v13  ;;  %v849_v31 = vadd.f32 %v796_v9, %v724_v21  ;;  %v1079_v32 = vrot.slane %v1031_v23, 2  ;;  %v1763_v34 = vunpack.c.l.bf16 %v1457_v12 }
  0x27   : > { %v956_v36 = vsel %vm378_vm1, %v954_v22, %v955_v24  ;;  %v958_v37 = vsel %vm378_vm1, %v955_v24, %v957_v25  ;;  %v1080_v38 = vrot.slane %v1032_v26, 2  ;;  %v1082_v39 = vrot.slane %v1033_v27, 2 }
  0x28   : > { %v885_v41 = vadd.f32 %v869_v59, %v848_v30  ;;  %v886_v42 = vadd.f32 %v870_v6, %v849_v31  ;;  %v1769_v43 = vunpack.c.h.bf16 %v1457_v12  ;;  %v1772_v45 = vunpack.c.l.bf16 %v1458_v29 }
  0x29   : > { %v1081_v48 = vsel %vm504_vm2, %v1079_v32, %v1080_v38  ;;  %v1083_v49 = vsel %vm504_vm2, %v1080_v38, %v1082_v39  ;;  %v1777_v50 = vunpack.c.h.bf16 %v1458_v29  ;;  %v1779_v51 = vunpack.c.l.bf16 %v242_v35 }
  0x2a   : > { %v1010_v52 = vadd.f32 %v956_v36, %v885_v41  ;;  %v1011_v53 = vadd.f32 %v958_v37, %v886_v42  ;;  %v1781_v54 = vunpack.c.l.bf16 %v243_v40  ;;  %v1783_v56 = vunpack.c.h.bf16 %v243_v40 }
  0x2b   : > { %v1785_v57 = vunpack.c.l.bf16 %v245_v44  ;;  %v1787_v58 = vunpack.c.l.bf16 %v248_v47  ;;  %v301_v59 = vmul.f32 %v1763_v34, %v1653_v2  ;;  %v302_v60 = vmul.f32 %v1769_v43, %v1653_v2 }
  0x2c   : > { %v1135_v61 = vadd.f32 %v1081_v48, %v1010_v52  ;;  %v1136_v62 = vadd.f32 %v1083_v49, %v1011_v53  ;;  %v342_v63 = vmul.f32 %v1763_v34, %v1658_v3  ;;  %v343_v1 = vmul.f32 %v1769_v43, %v1658_v3 }
  0x2d   : > { %v344_v5 = vmul.f32 %v1658_v3, %v1779_v51  ;;  %v468_v6 = vmul.f32 %v1763_v34, %v1663_v4  ;;  %v469_v7 = vmul.f32 %v1769_v43, %v1663_v4  ;;  %v470_v8 = vmul.f32 %v1663_v4, %v1779_v51 }
  0x2e   : > { %v1151_v9 = vpack.c.bf16 %v1136_v62, %v1135_v61  ;;  %v399_v10 = vrot.slane %v342_v63, 1  ;;  %v400_v11 = vrot.slane %v343_v1, 1  ;;  %v590_v12 = vmul.f32 %v1684_v19, %v1781_v54 }
  0x2f   : > { %v402_v13 = vrot.slane %v344_v5, 1  ;;  %v525_v21 = vrot.slane %v468_v6, 2  ;;  %v526_v22 = vrot.slane %v469_v7, 2  ;;  %v528_v23 = vrot.slane %v470_v8, 2 }
  0x30   : > { %1471 = vmatprep.mubr.msk.bf16.mxu0 %vm1167_vm3, %v1151_v9  ;;  %v401_v24 = vsel %vm378_vm1, %v399_v10, %v400_v11  ;;  %v591_v25 = vmul.f32 %v1684_v19, %v1783_v56  ;;  %v631_v26 = vmul.f32 %v1698_v28, %v1781_v54  ;;  %v632_v27 = vmul.f32 %v1698_v28, %v1783_v56  ;;  %v237_v9 = vld [vmem:[%s1648_s29 + $0x24] sm:$0xff]  }
  0x31   : > { %v403_v29 = vsel %vm378_vm1, %v400_v11, %v402_v13  ;;  %v443_v30 = vadd.f32 %v401_v24, %v301_v59  ;;  %v527_v31 = vsel %vm504_vm2, %v525_v21, %v526_v22  ;;  %v529_v32 = vsel %vm504_vm2, %v526_v22, %v528_v23 }
  0x32   : > { %v444_v35 = vadd.f32 %v403_v29, %v302_v60  ;;  %v633_v36 = vmul.f32 %v1698_v28, %v1785_v57  ;;  %v687_v37 = vrot.slane %v631_v26, 1  ;;  %v688_v38 = vrot.slane %v632_v27, 1 }
  0x33   : > { %v569_v39 = vadd.f32 %v527_v31, %v443_v30  ;;  %v756_v40 = vmul.f32 %v1708_v33, %v1781_v54  ;;  %v757_v41 = vmul.f32 %v1708_v33, %v1783_v56  ;;  %v758_v42 = vmul.f32 %v1708_v33, %v1785_v57 }
  0x34   : > { %v570_v44 = vadd.f32 %v529_v32, %v444_v35  ;;  %v689_v47 = vsel %vm378_vm1, %v687_v37, %v688_v38  ;;  %v690_v48 = vrot.slane %v633_v36, 1  ;;  %v877_v49 = vmul.f32 %v1772_v45, %v1724_v46 }
  0x35   : > { %v606_v52 = vadd.f32 %v590_v12, %v569_v39  ;;  %v812_v53 = vrot.slane %v756_v40, 2  ;;  %v813_v59 = vrot.slane %v757_v41, 2  ;;  %v815_v60 = vrot.slane %v758_v42, 2 }
  0x36   : > { %v607_v61 = vadd.f32 %v591_v25, %v570_v44  ;;  %v691_v62 = vsel %vm378_vm1, %v688_v38, %v690_v48  ;;  %v878_v63 = vmul.f32 %v1777_v50, %v1724_v46  ;;  %v918_v1 = vmul.f32 %v1772_v45, %v1734_v55  ;;  %v239_v25 = vld [vmem:[%s1648_s29 + $0x2c] sm:$0x1] }
  0x37   : > { %v731_v5 = vadd.f32 %v689_v47, %v606_v52  ;;  %v814_v6 = vsel %vm504_vm2, %v812_v53, %v813_v59  ;;  %v816_v7 = vsel %vm504_vm2, %v813_v59, %v815_v60  ;;  %v919_v8 = vmul.f32 %v1777_v50, %v1734_v55 }
  0x38   : > { %v732_v10 = vadd.f32 %v691_v62, %v607_v61  ;;  %v920_v11 = vmul.f32 %v1734_v55, %v1787_v58  ;;  %v974_v12 = vrot.slane %v918_v1, 1  ;;  %v1043_v13 = vmul.f32 %v1772_v45, %v1743_v0 }
  0x39   : > { %v856_v21 = vadd.f32 %v814_v6, %v731_v5  ;;  %v975_v22 = vrot.slane %v919_v8, 1  ;;  %v1044_v23 = vmul.f32 %v1777_v50, %v1743_v0  ;;  %v1045_v24 = vmul.f32 %v1743_v0, %v1787_v58 }
  0x3a   : > { %v857_v26 = vadd.f32 %v816_v7, %v732_v10  ;;  %v977_v27 = vrot.slane %v920_v11, 1  ;;  %v1099_v29 = vrot.slane %v1043_v13, 2  ;;  %v1848_v30 = vunpack.c.l.bf16 %v237_v9 }
  0x3b   : > { %v893_v31 = vadd.f32 %v877_v49, %v856_v21  ;;  %v976_v32 = vsel %vm378_vm1, %v974_v12, %v975_v22  ;;  %v1100_v35 = vrot.slane %v1044_v23, 2  ;;  %v1102_v36 = vrot.slane %v1045_v24, 2 }
  0x3c   : > { %v894_v37 = vadd.f32 %v878_v63, %v857_v26  ;;  %v978_v38 = vsel %vm378_vm1, %v975_v22, %v977_v27  ;;  %v1852_v39 = vunpack.c.h.bf16 %v237_v9  ;;  %v1854_v40 = vunpack.c.l.bf16 %v239_v25 }
  0x3d   : > { %v1018_v41 = vadd.f32 %v976_v32, %v893_v31  ;;  %v1101_v42 = vsel %vm504_vm2, %v1099_v29, %v1100_v35  ;;  %v1103_v44 = vsel %vm504_vm2, %v1100_v35, %v1102_v36  ;;  %v295_v47 = vmul.f32 %v1653_v2, %v1671_v14 }
  0x3e   : > { %v1019_v48 = vadd.f32 %v978_v38, %v894_v37  ;;  %v296_v49 = vmul.f32 %v1653_v2, %v1677_v17  ;;  %v333_v52 = vmul.f32 %v1658_v3, %v1671_v14  ;;  %v334_v53 = vmul.f32 %v1658_v3, %v1677_v17 }
  0x3f   : > { %v1143_v59 = vadd.f32 %v1101_v42, %v1018_v41  ;;  %v335_v60 = vmul.f32 %v1658_v3, %v1679_v18  ;;  %v459_v61 = vmul.f32 %v1663_v4, %v1671_v14  ;;  %v460_v62 = vmul.f32 %v1663_v4, %v1677_v17 }
  0x40   : > { %v1144_v63 = vadd.f32 %v1103_v44, %v1019_v48  ;;  %v384_v1 = vrot.slane %v333_v52, 1  ;;  %v385_v5 = vrot.slane %v334_v53, 1  ;;  %v461_v6 = vmul.f32 %v1663_v4, %v1679_v18 }
  0x41   : > { %v387_v7 = vrot.slane %v335_v60, 1  ;;  %v510_v8 = vrot.slane %v459_v61, 2  ;;  %v511_v9 = vrot.slane %v460_v62, 2  ;;  %v584_v10 = vmul.f32 %v1673_v15, %v1684_v19 }
  0x42   : > { %v1155_v11 = vpack.c.bf16 %v1144_v63, %v1143_v59  ;;  %v386_v12 = vsel %vm378_vm1, %v384_v1, %v385_v5  ;;  %v513_v13 = vrot.slane %v461_v6, 2  ;;  %v585_v14 = vmul.f32 %v1675_v16, %v1684_v19 }
  0x43   : > { %v388_v17 = vsel %vm378_vm1, %v385_v5, %v387_v7  ;;  %v437_v21 = vadd.f32 %v386_v12, %v295_v47  ;;  %v512_v22 = vsel %vm504_vm2, %v510_v8, %v511_v9  ;;  %v622_v18 = vmul.f32 %v1673_v15, %v1698_v28  ;;  %v249_v7 = vld [vmem:[%s1648_s29 + $0x54] sm:$0xff]  }
  0x44   : > { %1479 = vmatprep.mubr.msk.bf16.mxu1 %vm1167_vm3, %v1155_v11  ;;  %v438_v23 = vadd.f32 %v388_v17, %v296_v49  ;;  %v514_v24 = vsel %vm504_vm2, %v511_v9, %v513_v13  ;;  %v623_v25 = vmul.f32 %v1675_v16, %v1698_v28  ;;  %v624_v26 = vmul.f32 %v1698_v28, %v1686_v20 }
  0x45   : > { %v563_v27 = vadd.f32 %v512_v22, %v437_v21  ;;  %v672_v29 = vrot.slane %v622_v18, 1  ;;  %v747_v31 = vmul.f32 %v1673_v15, %v1708_v33  ;;  %v748_v32 = vmul.f32 %v1675_v16, %v1708_v33  ;;  %v251_v21 = vld [vmem:[%s1648_s29 + $0x5c] sm:$0x1] }
  0x46   : > { %v564_v35 = vadd.f32 %v514_v24, %v438_v23  ;;  %v673_v36 = vrot.slane %v623_v25, 1  ;;  %v675_v37 = vrot.slane %v624_v26, 1  ;;  %v749_v38 = vmul.f32 %v1708_v33, %v1686_v20 }
  0x47   : > { %v600_v41 = vadd.f32 %v584_v10, %v563_v27  ;;  %v797_v42 = vrot.slane %v747_v31, 2  ;;  %v798_v44 = vrot.slane %v748_v32, 2  ;;  %v871_v47 = vmul.f32 %v1724_v46, %v1848_v30 }
  0x48   : > { %v601_v48 = vadd.f32 %v585_v14, %v564_v35  ;;  %v674_v49 = vsel %vm378_vm1, %v672_v29, %v673_v36  ;;  %v676_v52 = vsel %vm378_vm1, %v673_v36, %v675_v37  ;;  %v800_v53 = vrot.slane %v749_v38, 2 }
  0x49   : > { %v725_v59 = vadd.f32 %v674_v49, %v600_v41  ;;  %v799_v60 = vsel %vm504_vm2, %v797_v42, %v798_v44  ;;  %v872_v61 = vmul.f32 %v1724_v46, %v1852_v39  ;;  %v909_v62 = vmul.f32 %v1734_v55, %v1848_v30 }
  0x4a   : > { %v726_v63 = vadd.f32 %v676_v52, %v601_v48  ;;  %v801_v1 = vsel %vm504_vm2, %v798_v44, %v800_v53  ;;  %v910_v5 = vmul.f32 %v1734_v55, %v1852_v39  ;;  %v911_v6 = vmul.f32 %v1734_v55, %v1854_v40 }
  0x4b   : > { %v850_v8 = vadd.f32 %v799_v60, %v725_v59  ;;  %v959_v9 = vrot.slane %v909_v62, 1  ;;  %v1034_v10 = vmul.f32 %v1743_v0, %v1848_v30  ;;  %v1035_v11 = vmul.f32 %v1743_v0, %v1852_v39 }
  0x4c   : > { %v851_v12 = vadd.f32 %v801_v1, %v726_v63  ;;  %v960_v13 = vrot.slane %v910_v5, 1  ;;  %v962_v14 = vrot.slane %v911_v6, 1  ;;  %v1036_v17 = vmul.f32 %v1743_v0, %v1854_v40 }
  0x4d   : > { %v887_v22 = vadd.f32 %v871_v47, %v850_v8  ;;  %v1084_v18 = vrot.slane %v1034_v10, 2  ;;  %v1085_v23 = vrot.slane %v1035_v11, 2  ;;  %v1917_v24 = vunpack.c.l.bf16 %v249_v7 }
  0x4e   : > { %v888_v25 = vadd.f32 %v872_v61, %v851_v12  ;;  %v961_v26 = vsel %vm378_vm1, %v959_v9, %v960_v13  ;;  %v963_v27 = vsel %vm378_vm1, %v960_v13, %v962_v14  ;;  %v1087_v29 = vrot.slane %v1036_v17, 2 }
  0x4f   : > { %v1012_v31 = vadd.f32 %v961_v26, %v887_v22  ;;  %v1086_v32 = vsel %vm504_vm2, %v1084_v18, %v1085_v23  ;;  %v1922_v35 = vunpack.c.h.bf16 %v249_v7  ;;  %v1924_v36 = vunpack.c.l.bf16 %v251_v21 }
  0x50   : > { %v1013_v37 = vadd.f32 %v963_v27, %v888_v25  ;;  %v1088_v38 = vsel %vm504_vm2, %v1085_v23, %v1087_v29  ;;  %v303_v41 = vmul.f32 %v1653_v2, %v1781_v54  ;;  %v304_v42 = vmul.f32 %v1653_v2, %v1783_v56 }
  0x51   : > { %v1137_v44 = vadd.f32 %v1086_v32, %v1012_v31  ;;  %v345_v47 = vmul.f32 %v1658_v3, %v1781_v54  ;;  %v346_v48 = vmul.f32 %v1658_v3, %v1783_v56  ;;  %v347_v49 = vmul.f32 %v1658_v3, %v1785_v57 }
  0x52   : > { %v1138_v52 = vadd.f32 %v1088_v38, %v1013_v37  ;;  %v471_v53 = vmul.f32 %v1663_v4, %v1781_v54  ;;  %v472_v59 = vmul.f32 %v1663_v4, %v1783_v56  ;;  %v473_v60 = vmul.f32 %v1663_v4, %v1785_v57 }
  0x53   : > { %v404_v61 = vrot.slane %v345_v47, 1  ;;  %v405_v62 = vrot.slane %v346_v48, 1  ;;  %v407_v63 = vrot.slane %v347_v49, 1  ;;  %v592_v1 = vmul.f32 %v1772_v45, %v1684_v19 }
  0x54   : > { %v1152_v5 = vpack.c.bf16 %v1138_v52, %v1137_v44  ;;  %v530_v6 = vrot.slane %v471_v53, 2  ;;  %v531_v7 = vrot.slane %v472_v59, 2  ;;  %v533_v8 = vrot.slane %v473_v60, 2 }
  0x55   : > { %v406_v9 = vsel %vm378_vm1, %v404_v61, %v405_v62  ;;  %v408_v10 = vsel %vm378_vm1, %v405_v62, %v407_v63  ;;  %v593_v11 = vmul.f32 %v1777_v50, %v1684_v19  ;;  %v634_v12 = vmul.f32 %v1772_v45, %v1698_v28 }
  0x56   : > { %1472 = vmatmul.mubr.msk.bf16.vlgmr.msra.gmra.mrb[0].mxu0 %vm1167_vm3, %v1152_v5  ;;  %v445_v13 = vadd.f32 %v406_v9, %v303_v41  ;;  %v446_v14 = vadd.f32 %v408_v10, %v304_v42  ;;  %v532_v17 = vsel %vm504_vm2, %v530_v6, %v531_v7  ;;  %v534_v21 = vsel %vm504_vm2, %v531_v7, %v533_v8 }
  0x57   : > { %v635_v22 = vmul.f32 %v1777_v50, %v1698_v28  ;;  %v636_v18 = vmul.f32 %v1698_v28, %v1787_v58  ;;  %v692_v23 = vrot.slane %v634_v12, 1  ;;  %v759_v25 = vmul.f32 %v1772_v45, %v1708_v33 }
  0x58   : > { %v571_v26 = vadd.f32 %v532_v17, %v445_v13  ;;  %v572_v27 = vadd.f32 %v534_v21, %v446_v14  ;;  %v760_v29 = vmul.f32 %v1777_v50, %v1708_v33  ;;  %v761_v31 = vmul.f32 %v1708_v33, %v1787_v58 }
  0x59   : > { %v693_v32 = vrot.slane %v635_v22, 1  ;;  %v695_v37 = vrot.slane %v636_v18, 1  ;;  %v817_v38 = vrot.slane %v759_v25, 2  ;;  %v879_v41 = vmul.f32 %v1724_v46, %v1917_v24 }
  0x5a   : > { %v608_v42 = vadd.f32 %v592_v1, %v571_v26  ;;  %v609_v44 = vadd.f32 %v593_v11, %v572_v27  ;;  %v818_v47 = vrot.slane %v760_v29, 2  ;;  %v820_v48 = vrot.slane %v761_v31, 2 }
  0x5b   : > { %v694_v49 = vsel %vm378_vm1, %v692_v23, %v693_v32  ;;  %v696_v52 = vsel %vm378_vm1, %v693_v32, %v695_v37  ;;  %v880_v53 = vmul.f32 %v1724_v46, %v1922_v35  ;;  %v921_v59 = vmul.f32 %v1734_v55, %v1917_v24 }
  0x5c   : > { %v733_v60 = vadd.f32 %v694_v49, %v608_v42  ;;  %v734_v61 = vadd.f32 %v696_v52, %v609_v44  ;;  %v819_v62 = vsel %vm504_vm2, %v817_v38, %v818_v47  ;;  %v821_v63 = vsel %vm504_vm2, %v818_v47, %v820_v48 }
  0x5d   : > { %v922_v1 = vmul.f32 %v1734_v55, %v1922_v35  ;;  %v923_v5 = vmul.f32 %v1734_v55, %v1924_v36  ;;  %v979_v6 = vrot.slane %v921_v59, 1  ;;  %v1046_v7 = vmul.f32 %v1743_v0, %v1917_v24 }
  0x5e   : > { %v858_v8 = vadd.f32 %v819_v62, %v733_v60  ;;  %v859_v9 = vadd.f32 %v821_v63, %v734_v61  ;;  %v1047_v10 = vmul.f32 %v1743_v0, %v1922_v35  ;;  %v1048_v11 = vmul.f32 %v1743_v0, %v1924_v36 }
  0x5f   : > { %v980_v12 = vrot.slane %v922_v1, 1  ;;  %v982_v13 = vrot.slane %v923_v5, 1  ;;  %v1104_v14 = vrot.slane %v1046_v7, 2  ;;  %v297_v17 = vmul.f32 %v1673_v15, %v1653_v2 }
  0x60   : > { %v895_v21 = vadd.f32 %v879_v41, %v858_v8  ;;  %v896_v22 = vadd.f32 %v880_v53, %v859_v9  ;;  %v1105_v18 = vrot.slane %v1047_v10, 2  ;;  %v1107_v23 = vrot.slane %v1048_v11, 2 }
  0x61   : > { %v981_v25 = vsel %vm378_vm1, %v979_v6, %v980_v12  ;;  %v983_v26 = vsel %vm378_vm1, %v980_v12, %v982_v13  ;;  %v298_v27 = vmul.f32 %v1675_v16, %v1653_v2  ;;  %v336_v29 = vmul.f32 %v1673_v15, %v1658_v3 }
  0x62   : > { %v1020_v31 = vadd.f32 %v981_v25, %v895_v21  ;;  %v1021_v32 = vadd.f32 %v983_v26, %v896_v22  ;;  %v1106_v37 = vsel %vm504_vm2, %v1104_v14, %v1105_v18  ;;  %v1108_v38 = vsel %vm504_vm2, %v1105_v18, %v1107_v23 }
  0x63   : > { %v337_v41 = vmul.f32 %v1675_v16, %v1658_v3  ;;  %v338_v42 = vmul.f32 %v1658_v3, %v1686_v20  ;;  %v389_v44 = vrot.slane %v336_v29, 1  ;;  %v462_v47 = vmul.f32 %v1673_v15, %v1663_v4 }
  0x64   : > { %v1145_v48 = vadd.f32 %v1106_v37, %v1020_v31  ;;  %v1146_v49 = vadd.f32 %v1108_v38, %v1021_v32  ;;  %v463_v52 = vmul.f32 %v1675_v16, %v1663_v4  ;;  %v464_v53 = vmul.f32 %v1663_v4, %v1686_v20 }
  0x65   : > { %v390_v59 = vrot.slane %v337_v41, 1  ;;  %v392_v60 = vrot.slane %v338_v42, 1  ;;  %v515_v61 = vrot.slane %v462_v47, 2  ;;  %v586_v62 = vmul.f32 %v1684_v19, %v1848_v30 }
  0x66   : > { %v1156_v63 = vpack.c.bf16 %v1146_v49, %v1145_v48  ;;  %v516_v1 = vrot.slane %v463_v52, 2  ;;  %v518_v5 = vrot.slane %v464_v53, 2  ;;  %v587_v15 = vmul.f32 %v1684_v19, %v1852_v39 }
  0x67   : > { %v391_v6 = vsel %vm378_vm1, %v389_v44, %v390_v59  ;;  %v393_v7 = vsel %vm378_vm1, %v390_v59, %v392_v60  ;;  %v625_v16 = vmul.f32 %v1698_v28, %v1848_v30  ;;  %v626_v20 = vmul.f32 %v1698_v28, %v1852_v39  ;;  %v1459_v59 = vld [vmem:[%s1648_s29 + $0x60] sm:$0xff]  }
  0x68   : > { %1480 = vmatmul.mubr.msk.bf16.vlgmr.msra.gmra.mrb[0].mxu1 %vm1167_vm3, %v1156_v63  ;;  %v439_v8 = vadd.f32 %v391_v6, %v297_v17  ;;  %v440_v9 = vadd.f32 %v393_v7, %v298_v27  ;;  %v517_v10 = vsel %vm504_vm2, %v515_v61, %v516_v1  ;;  %v519_v11 = vsel %vm504_vm2, %v516_v1, %v518_v5  ;;  %v254_v7 = vld [vmem:[%s1648_s29 + $0x68] sm:$0x1] }
  0x69   : > { %v627_v12 = vmul.f32 %v1698_v28, %v1854_v40  ;;  %v677_v13 = vrot.slane %v625_v16, 1  ;;  %v678_v14 = vrot.slane %v626_v20, 1  ;;  %v750_v21 = vmul.f32 %v1708_v33, %v1848_v30 }
  0x6a   : > { %v565_v22 = vadd.f32 %v517_v10, %v439_v8  ;;  %v566_v18 = vadd.f32 %v519_v11, %v440_v9  ;;  %v751_v23 = vmul.f32 %v1708_v33, %v1852_v39  ;;  %v752_v17 = vmul.f32 %v1708_v33, %v1854_v40 }
  0x6b   : > { %v679_v25 = vsel %vm378_vm1, %v677_v13, %v678_v14  ;;  %v680_v26 = vrot.slane %v627_v12, 1  ;;  %v802_v27 = vrot.slane %v750_v21, 2  ;;  %v873_v29 = vmul.f32 %v1763_v34, %v1724_v46 }
  0x6c   : > { %v602_v31 = vadd.f32 %v586_v62, %v565_v22  ;;  %v603_v32 = vadd.f32 %v587_v15, %v566_v18  ;;  %v803_v37 = vrot.slane %v751_v23, 2  ;;  %v805_v38 = vrot.slane %v752_v17, 2 }
  0x6d   : > { %v681_v41 = vsel %vm378_vm1, %v678_v14, %v680_v26  ;;  %v874_v42 = vmul.f32 %v1769_v43, %v1724_v46  ;;  %v912_v44 = vmul.f32 %v1763_v34, %v1734_v55  ;;  %v913_v47 = vmul.f32 %v1769_v43, %v1734_v55 }
  0x6e   : > { %v727_v48 = vadd.f32 %v679_v25, %v602_v31  ;;  %v728_v49 = vadd.f32 %v681_v41, %v603_v32  ;;  %v804_v52 = vsel %vm504_vm2, %v802_v27, %v803_v37  ;;  %v806_v53 = vsel %vm504_vm2, %v803_v37, %v805_v38 }
  0x6f   : > { %v914_v60 = vmul.f32 %v1734_v55, %v1779_v51  ;;  %v964_v61 = vrot.slane %v912_v44, 1  ;;  %v965_v62 = vrot.slane %v913_v47, 1  ;;  %v1037_v63 = vmul.f32 %v1763_v34, %v1743_v0 }
  0x70   : > { %v852_v1 = vadd.f32 %v804_v52, %v727_v48  ;;  %v853_v5 = vadd.f32 %v806_v53, %v728_v49  ;;  %v1038_v15 = vmul.f32 %v1769_v43, %v1743_v0  ;;  %v1039_v6 = vmul.f32 %v1743_v0, %v1779_v51 }
  0x71   : > { %v966_v16 = vsel %vm378_vm1, %v964_v61, %v965_v62  ;;  %v967_v20 = vrot.slane %v914_v60, 1  ;;  %v1089_v8 = vrot.slane %v1037_v63, 2  ;;  %v2048_v9 = vunpack.c.l.bf16 %v1459_v59 }
  0x72   : > { %v889_v10 = vadd.f32 %v873_v29, %v852_v1  ;;  %v890_v11 = vadd.f32 %v874_v42, %v853_v5  ;;  %v1090_v12 = vrot.slane %v1038_v15, 2  ;;  %v1092_v13 = vrot.slane %v1039_v6, 2 }
  0x73   : > { %v968_v14 = vsel %vm378_vm1, %v965_v62, %v967_v20  ;;  %v2051_v21 = vunpack.c.h.bf16 %v1459_v59  ;;  %v2053_v22 = vunpack.c.l.bf16 %v254_v7  ;;  %v305_v18 = vmul.f32 %v1772_v45, %v1653_v2 }
  0x74   : > { %v1014_v23 = vadd.f32 %v966_v16, %v889_v10  ;;  %v1015_v17 = vadd.f32 %v968_v14, %v890_v11  ;;  %v1091_v25 = vsel %vm504_vm2, %v1089_v8, %v1090_v12  ;;  %v1093_v26 = vsel %vm504_vm2, %v1090_v12, %v1092_v13 }
  0x75   : > { %v306_v27 = vmul.f32 %v1777_v50, %v1653_v2  ;;  %v348_v29 = vmul.f32 %v1772_v45, %v1658_v3  ;;  %v349_v31 = vmul.f32 %v1777_v50, %v1658_v3  ;;  %v350_v32 = vmul.f32 %v1658_v3, %v1787_v58 }
  0x76   : > { %v1139_v37 = vadd.f32 %v1091_v25, %v1014_v23  ;;  %v1140_v38 = vadd.f32 %v1093_v26, %v1015_v17  ;;  %v474_v41 = vmul.f32 %v1772_v45, %v1663_v4  ;;  %v475_v42 = vmul.f32 %v1777_v50, %v1663_v4 }
  0x77   : > { %v409_v44 = vrot.slane %v348_v29, 1  ;;  %v410_v47 = vrot.slane %v349_v31, 1  ;;  %v412_v48 = vrot.slane %v350_v32, 1  ;;  %v476_v49 = vmul.f32 %v1663_v4, %v1787_v58 }
  0x78   : > { %v1153_v52 = vpack.c.bf16 %v1140_v38, %v1139_v37  ;;  %v535_v53 = vrot.slane %v474_v41, 2  ;;  %v536_v59 = vrot.slane %v475_v42, 2  ;;  %v594_v60 = vmul.f32 %v1684_v19, %v1917_v24 }
  0x79   : > { %v411_v61 = vsel %vm378_vm1, %v409_v44, %v410_v47  ;;  %v413_v62 = vsel %vm378_vm1, %v410_v47, %v412_v48  ;;  %v538_v45 = vrot.slane %v476_v49, 2  ;;  %v595_v50 = vmul.f32 %v1684_v19, %v1922_v35 }
  0x7a   : > { %1475 = vmatprep.mubr.msk.bf16.mxu0 %vm1167_vm3, %v1153_v52  ;;  %v447_v63 = vadd.f32 %v411_v61, %v305_v18  ;;  %v448_v1 = vadd.f32 %v413_v62, %v306_v27  ;;  %v537_v58 = vsel %vm504_vm2, %v535_v53, %v536_v59  ;;  %v637_v5 = vmul.f32 %v1698_v28, %v1917_v24 }
  0x7b   : > { %v539_v15 = vsel %vm504_vm2, %v536_v59, %v538_v45  ;;  %v638_v6 = vmul.f32 %v1698_v28, %v1922_v35  ;;  %v639_v7 = vmul.f32 %v1698_v28, %v1924_v36  ;;  %v762_v16 = vmul.f32 %v1708_v33, %v1917_v24 }
  0x7c   : > { %v573_v20 = vadd.f32 %v537_v58, %v447_v63  ;;  %v574_v8 = vadd.f32 %v539_v15, %v448_v1  ;;  %v697_v10 = vrot.slane %v637_v5, 1  ;;  %v763_v11 = vmul.f32 %v1708_v33, %v1922_v35 }
  0x7d   : > { %v698_v12 = vrot.slane %v638_v6, 1  ;;  %v700_v13 = vrot.slane %v639_v7, 1  ;;  %v764_v14 = vmul.f32 %v1708_v33, %v1924_v36  ;;  %v822_v18 = vrot.slane %v762_v16, 2 }
  0x7e   : > { %v610_v23 = vadd.f32 %v594_v60, %v573_v20  ;;  %v611_v17 = vadd.f32 %v595_v50, %v574_v8  ;;  %v823_v25 = vrot.slane %v763_v11, 2  ;;  %v881_v26 = vmul.f32 %v2048_v9, %v1724_v46 }
  0x7f   : > { %v699_v27 = vsel %vm378_vm1, %v697_v10, %v698_v12  ;;  %v701_v29 = vsel %vm378_vm1, %v698_v12, %v700_v13  ;;  %v825_v31 = vrot.slane %v764_v14, 2  ;;  %v882_v32 = vmul.f32 %v2051_v21, %v1724_v46 }
  0x80   : > { %v735_v37 = vadd.f32 %v699_v27, %v610_v23  ;;  %v736_v38 = vadd.f32 %v701_v29, %v611_v17  ;;  %v824_v41 = vsel %vm504_vm2, %v822_v18, %v823_v25  ;;  %v924_v42 = vmul.f32 %v2048_v9, %v1734_v55 }
  0x81   : > { %v826_v44 = vsel %vm504_vm2, %v823_v25, %v825_v31  ;;  %v925_v47 = vmul.f32 %v2051_v21, %v1734_v55  ;;  %v926_v48 = vmul.f32 %v1734_v55, %v2053_v22  ;;  %v1049_v49 = vmul.f32 %v2048_v9, %v1743_v0 }
  0x82   : > { %v860_v52 = vadd.f32 %v824_v41, %v735_v37  ;;  %v861_v53 = vadd.f32 %v826_v44, %v736_v38  ;;  %v984_v59 = vrot.slane %v924_v42, 1  ;;  %v1050_v60 = vmul.f32 %v2051_v21, %v1743_v0 }
  0x83   : > { %v985_v61 = vrot.slane %v925_v47, 1  ;;  %v987_v62 = vrot.slane %v926_v48, 1  ;;  %v1051_v45 = vmul.f32 %v1743_v0, %v2053_v22  ;;  %v1109_v50 = vrot.slane %v1049_v49, 2 }
  0x84   : > { %v897_v63 = vadd.f32 %v881_v26, %v860_v52  ;;  %v898_v1 = vadd.f32 %v882_v32, %v861_v53  ;;  %v1110_v58 = vrot.slane %v1050_v60, 2  ;;  %v299_v5 = vmul.f32 %v1653_v2, %v1848_v30 }
  0x85   : > { %v986_v15 = vsel %vm378_vm1, %v984_v59, %v985_v61  ;;  %v988_v6 = vsel %vm378_vm1, %v985_v61, %v987_v62  ;;  %v1112_v7 = vrot.slane %v1051_v45, 2  ;;  %v300_v16 = vmul.f32 %v1653_v2, %v1852_v39 }
  0x86   : > { %v1022_v20 = vadd.f32 %v986_v15, %v897_v63  ;;  %v1023_v8 = vadd.f32 %v988_v6, %v898_v1  ;;  %v1111_v10 = vsel %vm504_vm2, %v1109_v50, %v1110_v58  ;;  %v339_v11 = vmul.f32 %v1658_v3, %v1848_v30 }
  0x87   : > { %v1113_v12 = vsel %vm504_vm2, %v1110_v58, %v1112_v7  ;;  %v340_v13 = vmul.f32 %v1658_v3, %v1852_v39  ;;  %v341_v14 = vmul.f32 %v1658_v3, %v1854_v40  ;;  %v465_v18 = vmul.f32 %v1663_v4, %v1848_v30 }
  0x88   : > { %v1147_v23 = vadd.f32 %v1111_v10, %v1022_v20  ;;  %v1148_v2 = vadd.f32 %v1113_v12, %v1023_v8  ;;  %v394_v17 = vrot.slane %v339_v11, 1  ;;  %v466_v25 = vmul.f32 %v1663_v4, %v1852_v39  ;;  %v255_v20 = vld [vmem:[%s1648_s29 + $0x6c] sm:$0xff]  }
  0x89   : > { %v395_v26 = vrot.slane %v340_v13, 1  ;;  %v397_v27 = vrot.slane %v341_v14, 1  ;;  %v467_v29 = vmul.f32 %v1663_v4, %v1854_v40  ;;  %v520_v31 = vrot.slane %v465_v18, 2 }
  0x8a   : > { %v1157_v32 = vpack.c.bf16 %v1148_v2, %v1147_v23  ;;  %v521_v37 = vrot.slane %v466_v25, 2  ;;  %v588_v3 = vmul.f32 %v1763_v34, %v1684_v19  ;;  %v589_v30 = vmul.f32 %v1769_v43, %v1684_v19  ;;  %v2175_v23 = vld [vmem:[%s1648_s29 + $0x74] sm:$0x1]  ;;  %s1409_s29 = sshll.u32 %s2330_s28, 1 }
  0x8b   : > { %v396_v38 = vsel %vm378_vm1, %v394_v17, %v395_v26  ;;  %v398_v41 = vsel %vm378_vm1, %v395_v26, %v397_v27  ;;  %v523_v42 = vrot.slane %v467_v29, 2  ;;  %v628_v39 = vmul.f32 %v1763_v34, %v1698_v28  ;;  %s219_s5 = sadd.s32 %s1410_s30, %s1409_s29 }
  0x8c   : > { %1483 = vmatprep.mubr.msk.bf16.mxu1 %vm1167_vm3, %v1157_v32  ;;  %v441_v4 = vadd.f32 %v396_v38, %v299_v5  ;;  %v442_v40 = vadd.f32 %v398_v41, %v300_v16  ;;  %v522_v44 = vsel %vm504_vm2, %v520_v31, %v521_v37  ;;  %v629_v47 = vmul.f32 %v1769_v43, %v1698_v28  ;;  %s1411_s6 = sshll.u32 %s219_s5, 3 }
  0x8d   : > { %v524_v48 = vsel %vm504_vm2, %v521_v37, %v523_v42  ;;  %v630_v19 = vmul.f32 %v1698_v28, %v1779_v51  ;;  %v682_v49 = vrot.slane %v628_v39, 1  ;;  %v753_v52 = vmul.f32 %v1763_v34, %v1708_v33  ;;  %v1533_v39 = vld [vmem:[%s2313_s1 + $0x1] ss:$0 sm:$0xff]  ;;  %s2263_s11 = scalar_lea.vmem %s2316_s4, %s1411_s6 }
  0x8e   : > { %v567_v53 = vadd.f32 %v522_v44, %v441_v4  ;;  %v568_v59 = vadd.f32 %v524_v48, %v442_v40  ;;  %v683_v60 = vrot.slane %v629_v47, 1  ;;  %v754_v61 = vmul.f32 %v1769_v43, %v1708_v33 }
  0x8f   : > { %v685_v62 = vrot.slane %v630_v19, 1  ;;  %v755_v45 = vmul.f32 %v1708_v33, %v1779_v51  ;;  %v807_v50 = vrot.slane %v753_v52, 2  ;;  %v875_v63 = vmul.f32 %v1724_v46, %v1781_v54  ;;  %v1534_v19 = vld [vmem:[%s2313_s1 + $0x2] ss:$0 sm:$0xff] }
  0x90   : > { %v604_v28 = vadd.f32 %v588_v3, %v567_v53  ;;  %v605_v1 = vadd.f32 %v589_v30, %v568_v59  ;;  %v684_v58 = vsel %vm378_vm1, %v682_v49, %v683_v60  ;;  %v808_v34 = vrot.slane %v754_v61, 2 }
  0x91   : > { %v686_v5 = vsel %vm378_vm1, %v683_v60, %v685_v62  ;;  %v810_v15 = vrot.slane %v755_v45, 2  ;;  %v876_v43 = vmul.f32 %v1724_v46, %v1783_v56  ;;  %v915_v6 = vmul.f32 %v1734_v55, %v1781_v54 }
  0x92   : > { %v729_v33 = vadd.f32 %v684_v58, %v604_v28  ;;  %v730_v51 = vadd.f32 %v686_v5, %v605_v1  ;;  %v809_v7 = vsel %vm504_vm2, %v807_v50, %v808_v34  ;;  %v916_v16 = vmul.f32 %v1734_v55, %v1783_v56  ;;  %v1535_v50 = vld [vmem:[%s2313_s1 + $0x3] ss:$0 sm:$0xff] }
  0x93   : > { %v811_v8 = vsel %vm504_vm2, %v808_v34, %v810_v15  ;;  %v917_v10 = vmul.f32 %v1734_v55, %v1785_v57  ;;  %v969_v11 = vrot.slane %v915_v6, 1  ;;  %v1040_v46 = vmul.f32 %v1743_v0, %v1781_v54  ;;  %v1536_v34 = vld [vmem:[%s2313_s1 + $0x4] ss:$0 sm:$0xff] }
  0x94   : > { %v854_v12 = vadd.f32 %v809_v7, %v729_v33  ;;  %v855_v13 = vadd.f32 %v811_v8, %v730_v51  ;;  %v970_v14 = vrot.slane %v916_v16, 1  ;;  %v1041_v18 = vmul.f32 %v1743_v0, %v1783_v56  ;;  %v1537_v8 = vld [vmem:[%s2313_s1 + $0x5] ss:$0 sm:$0xff] }
  0x95   : > { %v972_v2 = vrot.slane %v917_v10, 1  ;;  %v1042_v17 = vmul.f32 %v1743_v0, %v1785_v57  ;;  %v1094_v25 = vrot.slane %v1040_v46, 2  ;;  %v2179_v26 = vunpack.c.l.bf16 %v255_v20  ;;  %v1532_v0 = vld [vmem:[%s2313_s1] ss:$0 sm:$0xff] }
  0x96   : > { %v891_v55 = vadd.f32 %v875_v63, %v854_v12  ;;  %v892_v27 = vadd.f32 %v876_v43, %v855_v13  ;;  %v971_v29 = vsel %vm378_vm1, %v969_v11, %v970_v14  ;;  %v1095_v54 = vrot.slane %v1041_v18, 2 }
  0x97   : > { %v973_v31 = vsel %vm378_vm1, %v970_v14, %v972_v2  ;;  %v1097_v32 = vrot.slane %v1042_v17, 2  ;;  %v2183_v37 = vunpack.c.h.bf16 %v255_v20  ;;  %v287_v56 = vunpack.c.l.bf16 %v2175_v23  ;;  %v1538_v17 = vld [vmem:[%s2313_s1 + $0x6] ss:$0 sm:$0xff] }
  0x98   : > { %v1016_v3 = vadd.f32 %v971_v29, %v891_v55  ;;  %v1017_v30 = vadd.f32 %v973_v31, %v892_v27  ;;  %v1096_v38 = vsel %vm504_vm2, %v1094_v25, %v1095_v54  ;;  %v307_v57 = vmul.f32 %v1532_v0, %v1917_v24 }
  0x99   : > { %v1098_v41 = vsel %vm504_vm2, %v1095_v54, %v1097_v32  ;;  %v308_v42 = vmul.f32 %v1532_v0, %v1922_v35  ;;  %v351_v4 = vmul.f32 %v1533_v39, %v1917_v24  ;;  %v352_v40 = vmul.f32 %v1533_v39, %v1922_v35 }
  0x9a   : > { %v1141_v44 = vadd.f32 %v1096_v38, %v1016_v3  ;;  %v1142_v47 = vadd.f32 %v1098_v41, %v1017_v30  ;;  %v353_v48 = vmul.f32 %v1533_v39, %v1924_v36  ;;  %v477_v49 = vmul.f32 %v1534_v19, %v1917_v24  ;;  %v1540_v39 = vld [vmem:[%s2313_s1 + $0x8] ss:$0 sm:$0xff] }
  0x9b   : > { %v414_v52 = vrot.slane %v351_v4, 1  ;;  %v415_v53 = vrot.slane %v352_v40, 1  ;;  %v478_v59 = vmul.f32 %v1534_v19, %v1922_v35  ;;  %v479_v60 = vmul.f32 %v1534_v19, %v1924_v36 }
  0x9c   : > { %v1154_v61 = vpack.c.bf16 %v1142_v47, %v1141_v44  ;;  %v417_v62 = vrot.slane %v353_v48, 1  ;;  %v540_v45 = vrot.slane %v477_v49, 2  ;;  %v596_v63 = vmul.f32 %v1535_v50, %v2048_v9 }
  0x9d   : > { %v416_v28 = vsel %vm378_vm1, %v414_v52, %v415_v53  ;;  %v541_v1 = vrot.slane %v478_v59, 2  ;;  %v543_v58 = vrot.slane %v479_v60, 2  ;;  %v597_v24 = vmul.f32 %v1535_v50, %v2051_v21 }
  0x9e   : > { %1476 = vmatmul.mubr.msk.bf16.gmra.mrb[4].mxu0 %vm1167_vm3, %v1154_v61  ;;  %v418_v35 = vsel %vm378_vm1, %v415_v53, %v417_v62  ;;  %v449_v36 = vadd.f32 %v416_v28, %v307_v57  ;;  %v640_v5 = vmul.f32 %v1536_v34, %v2048_v9  ;;  %v641_v15 = vmul.f32 %v1536_v34, %v2051_v21 }
  0x9f   : > { %v450_v43 = vadd.f32 %v418_v35, %v308_v42  ;;  %v542_v6 = vsel %vm504_vm2, %v540_v45, %v541_v1  ;;  %v544_v33 = vsel %vm504_vm2, %v541_v1, %v543_v58  ;;  %v642_v51 = vmul.f32 %v1536_v34, %v2053_v22 }
  0xa0   : > { %v575_v7 = vadd.f32 %v542_v6, %v449_v36  ;;  %v702_v16 = vrot.slane %v640_v5, 1  ;;  %v703_v20 = vrot.slane %v641_v15, 1  ;;  %v765_v10 = vmul.f32 %v1537_v8, %v2048_v9 }
  0xa1   : > { %v576_v11 = vadd.f32 %v544_v33, %v450_v43  ;;  %v705_v46 = vrot.slane %v642_v51, 1  ;;  %v766_v12 = vmul.f32 %v1537_v8, %v2051_v21  ;;  %v767_v13 = vmul.f32 %v1537_v8, %v2053_v22  ;;  %v1539_v22 = vld [vmem:[%s2313_s1 + $0x7] ss:$0 sm:$0xff] }
  0xa2   : > { %v612_v14 = vadd.f32 %v596_v63, %v575_v7  ;;  %v704_v18 = vsel %vm378_vm1, %v702_v16, %v703_v20  ;;  %v827_v2 = vrot.slane %v765_v10, 2  ;;  %v883_v25 = vmul.f32 %v1538_v17, %v2179_v26  ;;  %v1424_v63 = vld [vmem:[%s2315_s3] ss:$0 sm:$0xff] }
  0xa3   : > { %v613_v55 = vadd.f32 %v597_v24, %v576_v11  ;;  %v706_v27 = vsel %vm378_vm1, %v703_v20, %v705_v46  ;;  %v828_v9 = vrot.slane %v766_v12, 2  ;;  %v830_v29 = vrot.slane %v767_v13, 2 }
  0xa4   : > { %v737_v54 = vadd.f32 %v704_v18, %v612_v14  ;;  %v884_v21 = vmul.f32 %v1538_v17, %v2183_v37  ;;  %v927_v31 = vmul.f32 %v1539_v22, %v2179_v26  ;;  %v928_v32 = vmul.f32 %v1539_v22, %v2183_v37 }
  0xa5   : > { %v738_v3 = vadd.f32 %v706_v27, %v613_v55  ;;  %v829_v30 = vsel %vm504_vm2, %v827_v2, %v828_v9  ;;  %v831_v38 = vsel %vm504_vm2, %v828_v9, %v830_v29  ;;  %v929_v0 = vmul.f32 %v1539_v22, %v287_v56 }
  0xa6   : > { %v862_v57 = vadd.f32 %v829_v30, %v737_v54  ;;  %v989_v41 = vrot.slane %v927_v31, 1  ;;  %v990_v42 = vrot.slane %v928_v32, 1  ;;  %v1052_v4 = vmul.f32 %v1540_v39, %v2179_v26 }
  0xa7   : > { %v863_v40 = vadd.f32 %v831_v38, %v738_v3  ;;  %v992_v44 = vrot.slane %v929_v0, 1  ;;  %v1053_v47 = vmul.f32 %v1540_v39, %v2183_v37  ;;  %v1054_v48 = vmul.f32 %v1540_v39, %v287_v56 }
  0xa8   : > { %v899_v19 = vadd.f32 %v883_v25, %v862_v57  ;;  %v991_v49 = vsel %vm378_vm1, %v989_v41, %v990_v42  ;;  %v1114_v52 = vrot.slane %v1052_v4, 2 }
  0xa9   : > { %v900_v53 = vadd.f32 %v884_v21, %v863_v40  ;;  %v993_v59 = vsel %vm378_vm1, %v990_v42, %v992_v44  ;;  %v1115_v60 = vrot.slane %v1053_v47, 2  ;;  %v1117_v61 = vrot.slane %v1054_v48, 2 }
  0xaa   : > { %v1024_v62 = vadd.f32 %v991_v49, %v899_v19 }
  0xab   : > { %v1025_v26 = vadd.f32 %v993_v59, %v900_v53  ;;  %v1116_v45 = vsel %vm504_vm2, %v1114_v52, %v1115_v60  ;;  %v1118_v37 = vsel %vm504_vm2, %v1115_v60, %v1117_v61 }
  0xac   : > { %v1149_v50 = vadd.f32 %v1116_v45, %v1024_v62 }
  0xad   : > { %v1150_v23 = vadd.f32 %v1118_v37, %v1025_v26 }
  0xaf   : > { %v1158_v56 = vpack.c.bf16 %v1150_v23, %v1149_v50 }
  0xb1   : > { %1484 = vmatmul.mubr.msk.bf16.gmra.mrb[4].mxu1 %vm1167_vm3, %v1158_v56 }
 0x129   : > { %v1473_v28 = vpop.f32.mrb[0].mxu0 }
 0x12a   : > { %v1239_v1 = vadd.f32 %v1473_v28, %v1424_v63  ;;  %v1230_v58 = vpop.f32.mrb[1].mxu0 }
 0x12b   : > { %v1231_v24 = vadd.f32 %v1424_v63, %v1230_v58  ;;  %v1474_v35 = vpop.f32.mrb[2].mxu0 }
 0x12c   : > { %1296 = vst.msk [vmem:[%s2263_s11 + $0x10] sm:$0xff] %vm1293_vm4, %v1239_v1  ;;  %v1242_v36 = vadd.f32 %v1474_v35, %v1424_v63  ;;  %v1233_v34 = vpop.f32.mrb[3].mxu0 }
 0x12d   : > { %1294 = vst.msk [vmem:[%s2263_s11] sm:$0xff] %vm1293_vm4, %v1231_v24  ;;  %v1234_v5 = vadd.f32 %v1424_v63, %v1233_v34 }
 0x12e   : > { %1297 = vst.msk [vmem:[%s2263_s11 + $0x18] sm:$0xff] %vm1293_vm4, %v1242_v36 }
 0x12f   : > { %1295 = vst.msk [vmem:[%s2263_s11 + $0x8] sm:$0xff] %vm1293_vm4, %v1234_v5 }
 0x13b   : > { %v1481_v15 = vpop.f32.mrb[0].mxu1 }
 0x13c   : > { %v1271_v43 = vadd.f32 %v1481_v15, %v1424_v63  ;;  %v1262_v6 = vpop.f32.mrb[1].mxu1 }
 0x13d   : > { %v1263_v33 = vadd.f32 %v1424_v63, %v1262_v6  ;;  %v1482_v51 = vpop.f32.mrb[2].mxu1 }
 0x13e   : > { %1304 = vst.msk [vmem:[%s2263_s11 + $0x50] sm:$0xff] %vm1293_vm4, %v1271_v43  ;;  %v1274_v7 = vadd.f32 %v1482_v51, %v1424_v63  ;;  %v1265_v16 = vpop.f32.mrb[3].mxu1 }
 0x13f   : > { %1302 = vst.msk [vmem:[%s2263_s11 + $0x40] sm:$0xff] %vm1293_vm4, %v1263_v33  ;;  %v1266_v20 = vadd.f32 %v1424_v63, %v1265_v16 }
 0x140   : > { %1305 = vst.msk [vmem:[%s2263_s11 + $0x58] sm:$0xff] %vm1293_vm4, %v1274_v7 }
 0x141   : > { %1303 = vst.msk [vmem:[%s2263_s11 + $0x48] sm:$0xff] %vm1293_vm4, %v1266_v20 }
 0x171   : > { %v1477_v8 = vpop.f32.mrb[4].mxu0 }
 0x172   : > { %v1255_v10 = vadd.f32 %v1477_v8, %v1424_v63  ;;  %v1246_v11 = vpop.f32.mrb[5].mxu0 }
 0x173   : > { %v1247_v46 = vadd.f32 %v1424_v63, %v1246_v11  ;;  %v1478_v12 = vpop.f32.mrb[6].mxu0 }
 0x174   : > { %1300 = vst.msk [vmem:[%s2263_s11 + $0x30] sm:$0xff] %vm1293_vm4, %v1255_v10  ;;  %v1258_v13 = vadd.f32 %v1478_v12, %v1424_v63  ;;  %v1249_v14 = vpop.f32.mrb[7].mxu0 }
 0x175   : > { %1298 = vst.msk [vmem:[%s2263_s11 + $0x20] sm:$0xff] %vm1293_vm4, %v1247_v46  ;;  %v1250_v18 = vadd.f32 %v1424_v63, %v1249_v14 }
 0x176   : > { %1301 = vst.msk [vmem:[%s2263_s11 + $0x38] sm:$0xff] %vm1293_vm4, %v1258_v13 }
 0x177   : > { %1299 = vst.msk [vmem:[%s2263_s11 + $0x28] sm:$0xff] %vm1293_vm4, %v1250_v18 }
 0x184   : > { %v1485_v2 = vpop.f32.mrb[4].mxu1 }
 0x185   : > { %v1287_v17 = vadd.f32 %v1485_v2, %v1424_v63  ;;  %v1278_v25 = vpop.f32.mrb[5].mxu1 }
 0x186   : > { %v1279_v55 = vadd.f32 %v1424_v63, %v1278_v25  ;;  %v1486_v27 = vpop.f32.mrb[6].mxu1 }
 0x187   : > { %1308 = vst.msk [vmem:[%s2263_s11 + $0x70] sm:$0xff] %vm1293_vm4, %v1287_v17  ;;  %v1290_v9 = vadd.f32 %v1486_v27, %v1424_v63  ;;  %v1281_v29 = vpop.f32.mrb[7].mxu1 }
 0x188   : > { %1306 = vst.msk [vmem:[%s2263_s11 + $0x60] sm:$0xff] %vm1293_vm4, %v1279_v55  ;;  %v1282_v54 = vadd.f32 %v1424_v63, %v1281_v29 }
 0x189   : > { %1309 = vst.msk [vmem:[%s2263_s11 + $0x78] sm:$0xff] %vm1293_vm4, %v1290_v9 }
 0x18a   : > { %1307 = vst.msk [vmem:[%s2263_s11 + $0x68] sm:$0xff] %vm1293_vm4, %v1282_v54 }
 0x18b PF: > { %s14_s19 = sadd.s32 1, %s1579_s19   ;;  %s2317_s15 = smov %s1571_s17 }
 0x18c   : > { %p11_p7 = scmp.ge.s32.totalorder %s14_s19, 6   ;;  %s2318_s16 = smov %s1575_s18 }
 0x18d   : > { %s2319_s17 = smov %s2322_s20  ;;  %s2320_s18 = smov %s2326_s21 }
 0x18e   :  { %13 = sbr.rel (!%p11_p7) target bundleno = 3 (0x3), region = 67 }

</bundles_post_ra>
